<compile_context>
chip_gen: v7x
topology: tpu7x:2x2x1
jax: 0.10.0
libtpu: 0.0.40
codegen_flags: <defaults>
</compile_context>

<pallas_src>
import functools

import jax
import jax.numpy as jnp
from jax import lax
from jax.experimental import pallas as pl
from jax.experimental.pallas import tpu as pltpu

BN_EPS = 1e-5

# Per-pass VMEM byte budget used to size column tiles (double-buffered blocks + the
# in-kernel (R, cols) f32 temp).  Conservative for v7x's 64 MiB physical VMEM and for
# v5e's 16 MiB scoped default (which we raise explicitly via vmem_limit_bytes).
_VMEM_TILE_BUDGET = 16 * 1024 * 1024
_PASS1_COL_CAP = 65536      # stats pass has no big output block -> can go very wide
_PASS2_COL_CAP = 32768      # apply pass streams the big (R, cols) output


def _choose_cols(hw, bytes_per_col, cap):
    """Largest 128-multiple divisor of `hw` within the VMEM budget (fallback: hw)."""
    target = min(cap, max(128, _VMEM_TILE_BUDGET // max(bytes_per_col, 1)))
    if hw <= target:
        return hw
    t = (target // 128) * 128
    while t >= 128:
        if hw % t == 0:
            return t
        t -= 128
    # TODO(synk): pad+mask path for H*W with no 128-multiple divisor <= target;
    # falling back to a single full-width tile keeps correctness (block == full dim).
    return hw


# ----------------------------------------------------------------------------
# Pass 1: per-tile BN statistics.  One merged output block per grid step:
#   stat[:, 0] = per-row sum, stat[:, 1] = per-row mean-centered M2.
#   x_ref: (C_in, TM1)   w_ref: (R, C_in)   stat_ref: (R, 2)
# ----------------------------------------------------------------------------
def _stats_kernel(x_ref, w_ref, stat_ref):
    y = jnp.dot(w_ref[...], x_ref[...], preferred_element_type=jnp.float32)  # (R, TM1)
    inv_n = 1.0 / y.shape[1]
    s = jnp.sum(y, axis=1, keepdims=True)               # (R, 1)
    d = y - s * inv_n                                    # center on the tile mean
    m2 = jnp.sum(d * d, axis=1, keepdims=True)           # (R, 1)
    stat_ref[:, 0:1] = s
    stat_ref[:, 1:2] = m2


# ----------------------------------------------------------------------------
# Pass 2: recompute the matmul, apply BN scale/shift + ReLU, lane-dense store.
#   o_ref: (R, TM2)
# ----------------------------------------------------------------------------
def _apply_kernel(x_ref, w_ref, scale_ref, shift_ref, o_ref):
    y = jnp.dot(w_ref[...], x_ref[...], preferred_element_type=jnp.float32)  # (R, TM2)
    o_ref[...] = jnp.maximum(y * scale_ref[...] + shift_ref[...], 0.0)


@functools.partial(jax.jit, static_argnames=("max_cols",))
def upsample_conv_forward(x, weight, bias, gamma, beta, *, max_cols=None):
    """x: (N, C_in, H, W) f32.  weight: (C_in, C_out, 2, 2).  Returns (N, C_out, 2H, 2W)."""
    del bias  # per-channel additive bias is exactly cancelled by training-mode BatchNorm
    N, C_in, H, W = x.shape
    C_out = weight.shape[1]
    R = C_out * 4                      # rows: r = c*4 + a*2 + b
    HW = H * W

    cap1 = _PASS1_COL_CAP if max_cols is None else max_cols
    cap2 = _PASS2_COL_CAP if max_cols is None else max_cols
    tm1 = _choose_cols(HW, 4 * (2 * C_in + R), cap1)            # dbl-buf x + y temp
    tm2 = _choose_cols(HW, 4 * (2 * C_in + 3 * R), cap2)        # + dbl-buf out block
    # v7x megacore: keep >= 2 grid steps so both TensorCores get work.
    if N * (HW // tm2) < 2 and tm2 % 256 == 0:
        tm2 //= 2
    t1 = HW // tm1
    t2 = HW // tm2

    # --- small-tensor glue only: free reshape of x, tiny weight re-layout ---
    x3 = x.reshape(N, C_in, HW)                                   # layout-preserving
    w_mat = jnp.transpose(weight, (1, 2, 3, 0)).reshape(R, C_in)  # (R, C_in)

    # --- pass 1: per-tile partial stats (no big intermediate written) ---
    vmem1 = int(1.5 * 4 * (2 * C_in * tm1 + R * tm1 + R * C_in)) + (2 << 20)
    stats = pl.pallas_call(
        _stats_kernel,
        out_shape=jax.ShapeDtypeStruct((N, t1, R, 2), jnp.float32),
        grid_spec=pltpu.PrefetchScalarGridSpec(
            num_scalar_prefetch=0,
            grid=(N, t1),
            in_specs=[
                pl.BlockSpec((None, C_in, tm1), lambda n, t: (n, 0, t)),  # streamed X
                pl.BlockSpec((R, C_in), lambda n, t: (0, 0)),             # resident W
            ],
            out_specs=pl.BlockSpec((None, None, R, 2), lambda n, t: (n, t, 0, 0)),
        ),
        compiler_params=pltpu.CompilerParams(
            dimension_semantics=("parallel", "parallel"),
            vmem_limit_bytes=max(vmem1, 32 << 20)),
    )(x3, w_mat)

    # --- tiny JAX combine: Chan / law-of-total-variance (exact, cancellation-safe) ---
    stats = stats.reshape(N * t1, C_out, 4, 2)     # row r = c*4 + j
    sums = stats[..., 0]
    m2s = stats[..., 1]
    n_g = float(tm1)                               # elements per (tile, row) group
    count = float(4 * N * HW)                      # per-channel count = N * 2H * 2W
    sum_c = jnp.sum(sums, axis=(0, 2))             # (C_out,)
    mean_c = sum_c / count
    g_mean = sums / n_g
    m2_c = jnp.sum(m2s, axis=(0, 2)) + n_g * jnp.sum(
        (g_mean - mean_c[None, :, None]) ** 2, axis=(0, 2))
    var_c = m2_c / count                           # biased var (PyTorch training BN)
    scale_c = gamma * lax.rsqrt(var_c + BN_EPS)
    shift_c = beta - mean_c * scale_c
    scale_r = jnp.repeat(scale_c, 4).reshape(R, 1)
    shift_r = jnp.repeat(shift_c, 4).reshape(R, 1)

    # --- pass 2: fused convT-matmul + BN apply + ReLU, single big lane-dense write ---
    vmem2 = int(1.5 * 4 * (2 * C_in * tm2 + 3 * R * tm2 + R * C_in)) + (2 << 20)
    out3 = pl.pallas_call(
        _apply_kernel,
        out_shape=jax.ShapeDtypeStruct((N, R, HW), jnp.float32),
        grid_spec=pltpu.PrefetchScalarGridSpec(
            num_scalar_prefetch=0,
            grid=(N, t2),
            in_specs=[
                pl.BlockSpec((None, C_in, tm2), lambda n, t: (n, 0, t)),  # streamed X
                pl.BlockSpec((R, C_in), lambda n, t: (0, 0)),             # resident W
                pl.BlockSpec((R, 1), lambda n, t: (0, 0)),                # resident scale
                pl.BlockSpec((R, 1), lambda n, t: (0, 0)),                # resident shift
            ],
            out_specs=pl.BlockSpec((None, R, tm2), lambda n, t: (n, 0, t)),
        ),
        compiler_params=pltpu.CompilerParams(
            dimension_semantics=("parallel", "parallel"),
            vmem_limit_bytes=max(vmem2, 32 << 20)),
    )(x3, w_mat, scale_r, shift_r)

    # --- glue: scatter to NCHW.  One XLA transpose; the reshapes are layout-free. ---
    out = out3.reshape(N, C_out, 2, 2, H, W)
    out = jnp.transpose(out, (0, 1, 4, 2, 5, 3))    # (N, C_out, H, 2, W, 2)
    return out.reshape(N, C_out, 2 * H, 2 * W)


# ----------------------------------------------------------------------------
# Pure-JAX reference (includes the bias, so it also validates the cancellation).
# ----------------------------------------------------------------------------
def _reference(x, weight, bias, gamma, beta):
    N, C_in, H, W = x.shape
    C_out = weight.shape[1]
    y = jnp.einsum("nihw,ioab->nohawb", x, weight, precision=lax.Precision.HIGHEST)
    y = y.reshape(N, C_out, 2 * H, 2 * W) + bias[None, :, None, None]
    mean = jnp.mean(y, axis=(0, 2, 3), keepdims=True)
    var = jnp.var(y, axis=(0, 2, 3), keepdims=True)
    y = (y - mean) * lax.rsqrt(var + BN_EPS)
    y = y * gamma[None, :, None, None] + beta[None, :, None, None]
    return jnp.maximum(y, 0.0)


if __name__ == "__main__":
    N, C_in, C_out, H, W = 2, 4, 8, 16, 16
    key = jax.random.PRNGKey(0)
    kx, kw, kb, kg, kbeta = jax.random.split(key, 5)

    x = jax.random.normal(kx, (N, C_in, H, W), dtype=jnp.float32)

    # ConvTranspose2d params: weight (C_in, C_out, 2, 2), bias (C_out,)
    fan_in = C_in * 2 * 2
    bound = 1.0 / (fan_in ** 0.5)
    weight = jax.random.uniform(kw, (C_in, C_out, 2, 2), jnp.float32, -bound, bound)
    bias = jax.random.uniform(kb, (C_out,), jnp.float32, -bound, bound)

    # BatchNorm2d params
    gamma = jnp.ones((C_out,), jnp.float32) + 0.05 * jax.random.normal(kg, (C_out,), jnp.float32)
    beta = 0.05 * jax.random.normal(kbeta, (C_out,), jnp.float32)

    ref = _reference(x, weight, bias, gamma, beta)

    # default (single column tile per image at this toy size) and a forced multi-tile run
    out1 = jax.block_until_ready(upsample_conv_forward(x, weight, bias, gamma, beta))
    out2 = jax.block_until_ready(upsample_conv_forward(x, weight, bias, gamma, beta, max_cols=128))

    assert out1.shape == (N, C_out, 2 * H, 2 * W)
    err1 = float(jnp.max(jnp.abs(out1 - ref)))
    err2 = float(jnp.max(jnp.abs(out2 - ref)))
    assert err1 < 1e-3 and err2 < 1e-3, (err1, err2)
    print("KERNEL_OK")
</pallas_src>

<mosaic_0001>
module attributes {stable_mosaic.version = 11 : i64} {
  func.func @_stats_kernel(%arg0: i32, %arg1: i32, %arg2: memref<1x4x256xf32, #tpu.memory_space<vmem>>, %arg3: memref<32x4xf32, #tpu.memory_space<vmem>>, %arg4: memref<1x1x32x2xf32, #tpu.memory_space<vmem>>) attributes {dimension_semantics = [#tpu.dimension_semantics<parallel>, #tpu.dimension_semantics<parallel>], iteration_bounds = array<i64: 2, 1>, scalar_prefetch = 0 : i64, scratch_operands = 0 : i64, tpu.core_type = #tpu.core_type<tc>, window_params = [{transform_indices = @transform_0, window_bounds = array<i64: 1, 4, 256>}, {pipeline_mode = #tpu.pipeline_mode<synchronous>, transform_indices = @transform_1, window_bounds = array<i64: 32, 4>}, {transform_indices = @transform_2, window_bounds = array<i64: 1, 1, 32, 2>}]} {
    %c0 = arith.constant 0 : index
    %c0_0 = arith.constant 0 : index
    %0 = vector.load %arg3[%c0, %c0_0] : memref<32x4xf32, #tpu.memory_space<vmem>>, vector<32x4xf32>
    %c0_1 = arith.constant 0 : index
    %c0_2 = arith.constant 0 : index
    %c0_3 = arith.constant 0 : index
    %1 = vector.load %arg2[%c0_1, %c0_2, %c0_3] : memref<1x4x256xf32, #tpu.memory_space<vmem>>, vector<1x4x256xf32>
    %2 = vector.shape_cast %1 : vector<1x4x256xf32> to vector<4x256xf32>
    %cst = arith.constant dense<0.000000e+00> : vector<32x256xf32>
    %3 = tpu.matmul %0, %2, %cst {dimension_numbers = #tpu.dot_dimension_numbers<[1], [0], [0], [1], [0, 0, 1, 1], [], []>} : vector<32x4xf32>, vector<4x256xf32>, vector<32x256xf32> -> vector<32x256xf32>
    %cst_4 = arith.constant dense<0.000000e+00> : vector<32xf32>
    %4 = vector.multi_reduction <add>, %3, %cst_4 [1] : vector<32x256xf32> to vector<32xf32>
    %5 = vector.shape_cast %4 : vector<32xf32> to vector<32x1xf32>
    %cst_5 = arith.constant 3.906250e-03 : f32
    %6 = vector.broadcast %cst_5 : f32 to vector<32x1xf32>
    %7 = arith.mulf %5, %6 : vector<32x1xf32>
    %8 = vector.broadcast %7 : vector<32x1xf32> to vector<32x256xf32>
    %9 = arith.subf %3, %8 : vector<32x256xf32>
    %10 = arith.mulf %9, %9 : vector<32x256xf32>
    %cst_6 = arith.constant dense<0.000000e+00> : vector<32xf32>
    %11 = vector.multi_reduction <add>, %10, %cst_6 [1] : vector<32x256xf32> to vector<32xf32>
    %12 = vector.shape_cast %11 : vector<32xf32> to vector<32x1xf32>
    %c0_7 = arith.constant 0 : index
    %c0_8 = arith.constant 0 : index
    %c0_9 = arith.constant 0 : index
    %c0_10 = arith.constant 0 : index
    %13 = vector.load %arg4[%c0_7, %c0_8, %c0_9, %c0_10] : memref<1x1x32x2xf32, #tpu.memory_space<vmem>>, vector<1x1x32x1xf32>
    %14 = vector.shape_cast %13 : vector<1x1x32x1xf32> to vector<32x1xf32>
    %15 = vector.shape_cast %5 : vector<32x1xf32> to vector<1x1x32x1xf32>
    tpu.vector_store %arg4[%c0_7, %c0_8, %c0_9, %c0_10], %15 {strides = array<i32>} : memref<1x1x32x2xf32, #tpu.memory_space<vmem>>, vector<1x1x32x1xf32>,
    %c0_11 = arith.constant 0 : index
    %c0_12 = arith.constant 0 : index
    %c0_13 = arith.constant 0 : index
    %c1 = arith.constant 1 : index
    %16 = vector.load %arg4[%c0_11, %c0_12, %c0_13, %c1] : memref<1x1x32x2xf32, #tpu.memory_space<vmem>>, vector<1x1x32x1xf32>
    %17 = vector.shape_cast %16 : vector<1x1x32x1xf32> to vector<32x1xf32>
    %18 = vector.shape_cast %12 : vector<32x1xf32> to vector<1x1x32x1xf32>
    tpu.vector_store %arg4[%c0_11, %c0_12, %c0_13, %c1], %18 {strides = array<i32>} : memref<1x1x32x2xf32, #tpu.memory_space<vmem>>, vector<1x1x32x1xf32>,
    return
  }
  func.func @transform_0(%arg0: i32, %arg1: i32) -> (i32, i32, i32) {
    %c0_i32 = arith.constant 0 : i32
    %c0_i32_0 = arith.constant 0 : i32
    return %arg0, %c0_i32, %arg1 : i32, i32, i32
  }
  func.func @transform_1(%arg0: i32, %arg1: i32) -> (i32, i32) {
    %c0_i32 = arith.constant 0 : i32
    %c0_i32_0 = arith.constant 0 : i32
    %c0_i32_1 = arith.constant 0 : i32
    return %c0_i32, %c0_i32_0 : i32, i32
  }
  func.func @transform_2(%arg0: i32, %arg1: i32) -> (i32, i32, i32, i32) {
    %c0_i32 = arith.constant 0 : i32
    %c0_i32_0 = arith.constant 0 : i32
    %c0_i32_1 = arith.constant 0 : i32
    return %arg0, %arg1, %c0_i32, %c0_i32_0 : i32, i32, i32, i32
  }
}

module attributes {stable_mosaic.version = 11 : i64} {
  func.func @_apply_kernel(%arg0: i32, %arg1: i32, %arg2: memref<1x4x256xf32, #tpu.memory_space<vmem>>, %arg3: memref<32x4xf32, #tpu.memory_space<vmem>>, %arg4: memref<32x1xf32, #tpu.memory_space<vmem>>, %arg5: memref<32x1xf32, #tpu.memory_space<vmem>>, %arg6: memref<1x32x256xf32, #tpu.memory_space<vmem>>) attributes {dimension_semantics = [#tpu.dimension_semantics<parallel>, #tpu.dimension_semantics<parallel>], iteration_bounds = array<i64: 2, 1>, scalar_prefetch = 0 : i64, scratch_operands = 0 : i64, tpu.core_type = #tpu.core_type<tc>, window_params = [{transform_indices = @transform_0, window_bounds = array<i64: 1, 4, 256>}, {pipeline_mode = #tpu.pipeline_mode<synchronous>, transform_indices = @transform_1, window_bounds = array<i64: 32, 4>}, {pipeline_mode = #tpu.pipeline_mode<synchronous>, transform_indices = @transform_2, window_bounds = array<i64: 32, 1>}, {pipeline_mode = #tpu.pipeline_mode<synchronous>, transform_indices = @transform_3, window_bounds = array<i64: 32, 1>}, {transform_indices = @transform_4, window_bounds = array<i64: 1, 32, 256>}]} {
    %c0 = arith.constant 0 : index
    %c0_0 = arith.constant 0 : index
    %0 = vector.load %arg3[%c0, %c0_0] : memref<32x4xf32, #tpu.memory_space<vmem>>, vector<32x4xf32>
    %c0_1 = arith.constant 0 : index
    %c0_2 = arith.constant 0 : index
    %c0_3 = arith.constant 0 : index
    %1 = vector.load %arg2[%c0_1, %c0_2, %c0_3] : memref<1x4x256xf32, #tpu.memory_space<vmem>>, vector<1x4x256xf32>
    %2 = vector.shape_cast %1 : vector<1x4x256xf32> to vector<4x256xf32>
    %cst = arith.constant dense<0.000000e+00> : vector<32x256xf32>
    %3 = tpu.matmul %0, %2, %cst {dimension_numbers = #tpu.dot_dimension_numbers<[1], [0], [0], [1], [0, 0, 1, 1], [], []>} : vector<32x4xf32>, vector<4x256xf32>, vector<32x256xf32> -> vector<32x256xf32>
    %c0_4 = arith.constant 0 : index
    %c0_5 = arith.constant 0 : index
    %4 = vector.load %arg4[%c0_4, %c0_5] : memref<32x1xf32, #tpu.memory_space<vmem>>, vector<32x1xf32>
    %5 = vector.broadcast %4 : vector<32x1xf32> to vector<32x256xf32>
    %6 = arith.mulf %3, %5 : vector<32x256xf32>
    %c0_6 = arith.constant 0 : index
    %c0_7 = arith.constant 0 : index
    %7 = vector.load %arg5[%c0_6, %c0_7] : memref<32x1xf32, #tpu.memory_space<vmem>>, vector<32x1xf32>
    %8 = vector.broadcast %7 : vector<32x1xf32> to vector<32x256xf32>
    %9 = arith.addf %6, %8 : vector<32x256xf32>
    %cst_8 = arith.constant 0.000000e+00 : f32
    %10 = vector.broadcast %cst_8 : f32 to vector<32x256xf32>
    %11 = arith.maximumf %9, %10 : vector<32x256xf32>
    %c0_9 = arith.constant 0 : index
    %c0_10 = arith.constant 0 : index
    %c0_11 = arith.constant 0 : index
    %12 = vector.load %arg6[%c0_9, %c0_10, %c0_11] : memref<1x32x256xf32, #tpu.memory_space<vmem>>, vector<1x32x256xf32>
    %13 = vector.shape_cast %12 : vector<1x32x256xf32> to vector<32x256xf32>
    %14 = vector.shape_cast %11 : vector<32x256xf32> to vector<1x32x256xf32>
    tpu.vector_store %arg6[%c0_9, %c0_10, %c0_11], %14 {strides = array<i32>} : memref<1x32x256xf32, #tpu.memory_space<vmem>>, vector<1x32x256xf32>,
    return
  }
  func.func @transform_0(%arg0: i32, %arg1: i32) -> (i32, i32, i32) {
    %c0_i32 = arith.constant 0 : i32
    %c0_i32_0 = arith.constant 0 : i32
    return %arg0, %c0_i32, %arg1 : i32, i32, i32
  }
  func.func @transform_1(%arg0: i32, %arg1: i32) -> (i32, i32) {
    %c0_i32 = arith.constant 0 : i32
    %c0_i32_0 = arith.constant 0 : i32
    %c0_i32_1 = arith.constant 0 : i32
    return %c0_i32, %c0_i32_0 : i32, i32
  }
  func.func @transform_2(%arg0: i32, %arg1: i32) -> (i32, i32) {
    %c0_i32 = arith.constant 0 : i32
    %c0_i32_0 = arith.constant 0 : i32
    %c0_i32_1 = arith.constant 0 : i32
    return %c0_i32, %c0_i32_0 : i32, i32
  }
  func.func @transform_3(%arg0: i32, %arg1: i32) -> (i32, i32) {
    %c0_i32 = arith.constant 0 : i32
    %c0_i32_0 = arith.constant 0 : i32
    %c0_i32_1 = arith.constant 0 : i32
    return %c0_i32, %c0_i32_0 : i32, i32
  }
  func.func @transform_4(%arg0: i32, %arg1: i32) -> (i32, i32, i32) {
    %c0_i32 = arith.constant 0 : i32
    %c0_i32_0 = arith.constant 0 : i32
    return %arg0, %c0_i32, %arg1 : i32, i32, i32
  }
}

</mosaic_0001>

<bundles_post_ra>
// kernel: upsample_conv_forward.2
= control target key start
LH: loop header
LB: loop body
LE: loop exit
PB: predicated region body
PF: predicated region fallthrough
CT: control target
= control target key end

     0   :  { %s526_s9 = smov 0   ;;  %s528_s10 = smov 0   ;;  %s589_s0 = inlined_call_operand.vmem [shape: f32[2,4,256], index: 0, kind: input, shape index: {}]   ;;  %s590_s1 = inlined_call_operand.vmem [shape: f32[32,4], index: 1, kind: input, shape index: {}]   ;;  %s591_s2 = inlined_call_operand.vmem [shape: f32[2,1,32,2], index: 2, kind: output, shape index: {}]  }
   0x1   :  { %s530_s11 = smov 0  }
   0x2 LB: > { %s24_s12 = sadd.s32 1, %s504_s10  ;;  %p443_p0 = scmp.ge.s32.totalorder %s508_s11, 1  ;;  %s508_s11 = sphi %s530_s11, %s12_s11   ;;  %s504_s10 = sphi %s528_s10, %s593_s10   ;;  %s500_s9 = sphi %s526_s9, %s592_s9  }
   0x3   : > { %p26_p1 = scmp.ge.s32.totalorder %s24_s12, 2  ;;  %p133_p2 = scmp.lt.s32.totalorder %s508_s11, 3 }
   0x5   : > { %s595_s12 = smov (%p26_p1, %s24_s12), 0  ;;  %p134_p3 = pnand %p443_p0, %p133_p2 }
   0x6   : > { %p164_p4 = scmp.lt.s32.totalorder (!%p134_p3), %s500_s9, 1  ;;  %v510_v0 = vmov (!%p134_p3), 0.0   ;;  %vm202_vm0 = vcmask (!%p134_p3), 1043456   ;;  %v182_v3 = vld [vmem:[%s590_s1] sm:$0xff] (!%p134_p3)  ;;  %vm189_vm1 = vcmask (!%p134_p3), 31744   ;;  %v184_v4 = vld [vmem:[%s590_s1 + $0x10] sm:$0xff] (!%p134_p3) }
   0x7   : > { %137 = sbr.rel (%p134_p3) target bundleno = 538 (0x21a), region = 28  ;;  %271 = vmatprep.mubr.f32.mxu0 (!%p134_p3), %v510_v0  ;;  %283 = vmatprep.mubr.f32.mxu1 (!%p134_p3), %v510_v0  ;;  %v183_v5 = vld [vmem:[%s590_s1 + $0x8] sm:$0xff] (!%p134_p3)  ;;  %v185_v6 = vld [vmem:[%s590_s1 + $0x18] sm:$0xff] (!%p134_p3)  ;;  %vm340_vm2 = vcmask (!%p134_p3), 7168   ;;  %vm345_vm3 = vcmask (!%p134_p3), 15368  }
   0xe   : > { %s597_s9 = smov (!%p164_p4, %s500_s9), 1 }
   0xf   : > { %s456_s13 = sshll.u32 %s597_s9, 3  ;;  %s457_s25 = sshll.u32 %s597_s9, 5 }
  0x10   : > { %s171_s16 = scalar_lea.vmem %s589_s0, %s456_s13  ;;  %s566_s28 = scalar_lea.vmem %s591_s2, %s457_s25 }
  0x11   : > { %v186_v1 = vld [vmem:[%s171_s16] sm:$0xff] }
  0x12   : > { %v188_v2 = vcombine.high %v186_v1, %v186_v1 }
  0x14   : > { %448 = vmatprep.subr.msk.mxu0 %vm202_vm0, %v188_v2  ;;  %458 = vmatprep.subr.msk.mxu1 %vm202_vm0, %v188_v2 }
  0x15   : > { %449 = vmatpush1.msk.msra.mxu0 %vm202_vm0, %v186_v1  ;;  %459 = vmatpush1.msk.msra.mxu1 %vm202_vm0, %v186_v1 }
  0x16   : > { %450 = vmatmul.mubr.msk.f32.vlgmr.msra.gmra.mrb[0].mxu0 %vm189_vm1, %v182_v3  ;;  %452 = vmatmul.mubr.msk.f32.vlgmr.msra.gmra.mrb[0].mxu1 %vm189_vm1, %v184_v4 }
  0x17   : > { %277 = vmatprep.mubr.f32.mxu0 %v510_v0  ;;  %289 = vmatprep.mubr.f32.mxu1 %v510_v0 }
  0x1a   : > { %451 = vmatmul.mubr.msk.f32.gmra.mrb[2].mxu0 %vm189_vm1, %v183_v5  ;;  %453 = vmatmul.mubr.msk.f32.gmra.mrb[2].mxu1 %vm189_vm1, %v185_v6 }
  0xe9   : > { %v273_v7 = vpop.f32.mrb[0].mxu0  ;;  %v285_v8 = vpop.f32.mrb[0].mxu1 }
  0xea   : > { %v275_v9 = vpop.f32.mrb[1].mxu0  ;;  %v287_v10 = vpop.f32.mrb[1].mxu1 }
  0xeb   : > { %v302_v11 = vadd.f32 %v287_v10, %v285_v8  ;;  %v296_v12 = vadd.f32 %v275_v9, %v273_v7 }
  0xed   : > { %303 = vadd.xlane.f32.xlu1 %v302_v11  ;;  %v291_v13 = vpop.f32.mrb[2].mxu1  ;;  %297 = vadd.xlane.f32.xlu0 %v296_v12  ;;  %v279_v14 = vpop.f32.mrb[2].mxu0 }
  0xee   : > { %v281_v15 = vpop.f32.mrb[3].mxu0  ;;  %v293_v16 = vpop.f32.mrb[3].mxu1 }
  0xef   : > { %v299_v17 = vadd.f32 %v281_v15, %v279_v14  ;;  %v305_v18 = vadd.f32 %v293_v16, %v291_v13 }
  0xf1   : > { %306 = vadd.xlane.f32.xlu1 %v305_v18  ;;  %300 = vadd.xlane.f32.xlu0 %v299_v17 }
 0x17a   : > { %v304_v19 = vpop.xlane.xlu1 %303  ;;  %v298_v20 = vpop.xlane.xlu0 %297 }
 0x17b   : > { %v310_v21 = vmul.f32 0.00390625, %v304_v19  ;;  %343 = vst.msk [vmem:[%s566_s28 + $0x10] sm:$0xff] %vm340_vm2, %v304_v19  ;;  %v308_v22 = vmul.f32 0.00390625, %v298_v20  ;;  %341 = vst.msk [vmem:[%s566_s28] sm:$0xff] %vm340_vm2, %v298_v20 }
 0x17d   : > { %v316_v23 = vsub.f32 %v285_v8, %v310_v21  ;;  %v317_v24 = vsub.f32 %v287_v10, %v310_v21  ;;  %v312_v25 = vsub.f32 %v273_v7, %v308_v22  ;;  %v313_v26 = vsub.f32 %v275_v9, %v308_v22 }
 0x17e   : > { %v307_v27 = vpop.xlane.xlu1 %306  ;;  %v301_v28 = vpop.xlane.xlu0 %300 }
 0x17f   : > { %v311_v29 = vmul.f32 0.00390625, %v307_v27  ;;  %344 = vst.msk [vmem:[%s566_s28 + $0x18] sm:$0xff] %vm340_vm2, %v307_v27  ;;  %v309_v30 = vmul.f32 0.00390625, %v301_v28  ;;  %342 = vst.msk [vmem:[%s566_s28 + $0x8] sm:$0xff] %vm340_vm2, %v301_v28  ;;  %v320_v31 = vmul.f32 %v312_v25, %v312_v25  ;;  %v321_v32 = vmul.f32 %v313_v26, %v313_v26 }
 0x180   : > { %v324_v33 = vmul.f32 %v316_v23, %v316_v23  ;;  %v325_v34 = vmul.f32 %v317_v24, %v317_v24 }
 0x181   : > { %v318_v35 = vsub.f32 %v291_v13, %v311_v29  ;;  %v319_v36 = vsub.f32 %v293_v16, %v311_v29  ;;  %v314_v37 = vsub.f32 %v279_v14, %v309_v30  ;;  %v315_v38 = vsub.f32 %v281_v15, %v309_v30 }
 0x182   : > { %v328_v39 = vadd.f32 %v321_v32, %v320_v31  ;;  %v334_v40 = vadd.f32 %v325_v34, %v324_v33 }
 0x183   : > { %v322_v41 = vmul.f32 %v314_v37, %v314_v37  ;;  %v323_v42 = vmul.f32 %v315_v38, %v315_v38  ;;  %v326_v43 = vmul.f32 %v318_v35, %v318_v35  ;;  %v327_v44 = vmul.f32 %v319_v36, %v319_v36 }
 0x184   : > { %329 = vadd.xlane.f32.xlu0 %v328_v39 }
 0x185   : > { %v331_v45 = vadd.f32 %v323_v42, %v322_v41  ;;  %v337_v46 = vadd.f32 %v327_v44, %v326_v43 }
 0x187   : > { %332 = vadd.xlane.f32.xlu1 %v331_v45 }
 0x188   : > { %335 = vadd.xlane.f32.xlu0 %v334_v40 }
 0x18b   : > { %338 = vadd.xlane.f32.xlu1 %v337_v46 }
 0x211   : > { %v330_v47 = vpop.xlane.xlu0 %329 }
 0x212   : > { %346 = vst.msk [vmem:[%s566_s28] sm:$0xff] %vm345_vm3, %v330_v47 }
 0x214   : > { %v333_v48 = vpop.xlane.xlu1 %332 }
 0x215   : > { %347 = vst.msk [vmem:[%s566_s28 + $0x8] sm:$0xff] %vm345_vm3, %v333_v48  ;;  %v336_v49 = vpop.xlane.xlu0 %335 }
 0x216   : > { %348 = vst.msk [vmem:[%s566_s28 + $0x10] sm:$0xff] %vm345_vm3, %v336_v49 }
 0x218   : > { %v339_v50 = vpop.xlane.xlu1 %338 }
 0x219   : > { %349 = vst.msk [vmem:[%s566_s28 + $0x18] sm:$0xff] %vm345_vm3, %v339_v50 }
 0x21a PF: > { %s12_s11 = sadd.s32 1, %s508_s11   ;;  %s592_s9 = smov %s504_s10 }
 0x21b   : > { %p9_p5 = scmp.ge.s32.totalorder %s12_s11, 4   ;;  %s593_s10 = smov %s595_s12 }
 0x21d   :  { %11 = sbr.rel (!%p9_p5) target bundleno = 2 (0x2), region = 58 }

// kernel: upsample_conv_forward.3
= control target key start
LH: loop header
LB: loop body
LE: loop exit
PB: predicated region body
PF: predicated region fallthrough
CT: control target
= control target key end

     0   :  { %s619_s15 = smov 0   ;;  %s621_s16 = smov 0   ;;  %s706_s0 = inlined_call_operand.vmem [shape: f32[2,4,256], index: 0, kind: input, shape index: {}]   ;;  %s707_s1 = inlined_call_operand.vmem [shape: f32[32,4], index: 1, kind: input, shape index: {}]   ;;  %s708_s2 = inlined_call_operand.vmem [shape: f32[32,1], index: 2, kind: input, shape index: {}]   ;;  %s709_s3 = inlined_call_operand.vmem [shape: f32[32,1], index: 3, kind: input, shape index: {}]   ;;  %s710_s4 = inlined_call_operand.vmem [shape: f32[2,32,256], index: 4, kind: output, shape index: {}]  }
   0x1   :  { %s623_s17 = smov 0  }
   0x2 LB: > { %s26_s18 = sadd.s32 1, %s586_s16  ;;  %p522_p0 = scmp.ge.s32.totalorder %s590_s17, 1  ;;  %s590_s17 = sphi %s623_s17, %s14_s17   ;;  %s586_s16 = sphi %s621_s16, %s712_s16   ;;  %s582_s15 = sphi %s619_s15, %s711_s15  }
   0x3   : > { %p28_p1 = scmp.ge.s32.totalorder %s26_s18, 2  ;;  %p183_p2 = scmp.lt.s32.totalorder %s590_s17, 3 }
   0x5   : > { %s714_s18 = smov (%p28_p1, %s26_s18), 0  ;;  %p184_p3 = pnand %p522_p0, %p183_p2 }
   0x6   : > { %p218_p4 = scmp.lt.s32.totalorder (!%p184_p3), %s582_s15, 1  ;;  %v592_v0 = vmov (!%p184_p3), 0.0   ;;  %v353_v1 = vld [vmem:[%s708_s2 + $0x10] sm:$0xff] (!%p184_p3)  ;;  %v593_v2 = vmov (!%p184_p3), 0   ;;  %v351_v3 = vld [vmem:[%s708_s2] sm:$0xff] (!%p184_p3)  ;;  %v354_v4 = vld [vmem:[%s708_s2 + $0x18] sm:$0xff] (!%p184_p3) }
   0x7   : > { %187 = sbr.rel (%p184_p3) target bundleno = 246 (0xf6), region = 36  ;;  %326 = vmatprep.mubr.f32.mxu0 (!%p184_p3), %v592_v0  ;;  %338 = vmatprep.mubr.f32.mxu1 (!%p184_p3), %v592_v0  ;;  %v352_v5 = vld [vmem:[%s708_s2 + $0x8] sm:$0xff] (!%p184_p3)  ;;  %vm257_vm0 = vcmask (!%p184_p3), 1043456   ;;  %v237_v8 = vld [vmem:[%s707_s1] sm:$0xff] (!%p184_p3)  ;;  %vm244_vm1 = vcmask (!%p184_p3), 31744   ;;  %v239_v9 = vld [vmem:[%s707_s1 + $0x10] sm:$0xff] (!%p184_p3) }
   0x8   : > { %566 = vset.pattern.permute.xlu1 (!%p184_p3), %v593_v2  ;;  %565 = vset.pattern.permute.xlu0 (!%p184_p3), %v593_v2  ;;  %v384_v10 = vld [vmem:[%s709_s3 + $0x8] sm:$0xff] (!%p184_p3)  ;;  %v383_v11 = vld [vmem:[%s709_s3] sm:$0xff] (!%p184_p3)  ;;  %v240_v13 = vld [vmem:[%s707_s1 + $0x18] sm:$0xff] (!%p184_p3) }
   0x9   : > { %367 = vperm.xlu1 (!%p184_p3), %566, %v353_v1   ;;  %357 = vperm.xlu0 (!%p184_p3), %565, %v351_v3   ;;  %v238_v12 = vld [vmem:[%s707_s1 + $0x8] sm:$0xff] (!%p184_p3)  ;;  %v386_v14 = vld [vmem:[%s709_s3 + $0x18] sm:$0xff] (!%p184_p3)  ;;  %v385_v15 = vld [vmem:[%s709_s3 + $0x10] sm:$0xff] (!%p184_p3) }
   0xd   : > { %372 = vperm.xlu1 (!%p184_p3), %566, %v354_v4   ;;  %362 = vperm.xlu0 (!%p184_p3), %565, %v352_v5  }
   0xe   : > { %s716_s15 = smov (!%p218_p4, %s582_s15), 1 }
   0xf   : > { %s535_s23 = sshll.u32 %s716_s15, 3  ;;  %s536_s25 = sshll.u32 %s716_s15, 6 }
  0x10   : > { %s225_s30 = scalar_lea.vmem %s706_s0, %s535_s23  ;;  %s687_s28 = scalar_lea.vmem %s710_s4, %s536_s25 }
  0x11   : > { %v241_v6 = vld [vmem:[%s225_s30] sm:$0xff]  ;;  %394 = vperm.xlu1 %566, %v384_v10   ;;  %389 = vperm.xlu0 %565, %v383_v11  }
  0x12   : > { %v243_v7 = vcombine.high %v241_v6, %v241_v6 }
  0x14   : > { %527 = vmatprep.subr.msk.mxu0 %vm257_vm0, %v243_v7  ;;  %537 = vmatprep.subr.msk.mxu1 %vm257_vm0, %v243_v7 }
  0x15   : > { %528 = vmatpush1.msk.msra.mxu0 %vm257_vm0, %v241_v6  ;;  %538 = vmatpush1.msk.msra.mxu1 %vm257_vm0, %v241_v6 }
  0x16   : > { %529 = vmatmul.mubr.msk.f32.vlgmr.msra.gmra.mrb[0].mxu0 %vm244_vm1, %v237_v8  ;;  %531 = vmatmul.mubr.msk.f32.vlgmr.msra.gmra.mrb[0].mxu1 %vm244_vm1, %v239_v9 }
  0x17   : > { %332 = vmatprep.mubr.f32.mxu0 %v592_v0  ;;  %344 = vmatprep.mubr.f32.mxu1 %v592_v0 }
  0x18   : > { %404 = vperm.xlu1 %566, %v386_v14   ;;  %399 = vperm.xlu0 %565, %v385_v15  }
  0x1a   : > { %530 = vmatmul.mubr.msk.f32.gmra.mrb[2].mxu0 %vm244_vm1, %v238_v12  ;;  %532 = vmatmul.mubr.msk.f32.gmra.mrb[2].mxu1 %vm244_vm1, %v240_v13 }
  0x88   : > { %v358_v16 = vpop.permute.xlu0 %357  ;;  %v368_v17 = vpop.permute.xlu1 %367 }
  0x8c   : > { %v363_v18 = vpop.permute.xlu0 %362  ;;  %v373_v19 = vpop.permute.xlu1 %372 }
  0x90   : > { %v390_v20 = vpop.permute.xlu0 %389  ;;  %v395_v21 = vpop.permute.xlu1 %394 }
  0x97   : > { %v400_v28 = vpop.permute.xlu0 %399  ;;  %v405_v43 = vpop.permute.xlu1 %404 }
  0xe9   : > { %v328_v22 = vpop.f32.mrb[0].mxu0  ;;  %v340_v23 = vpop.f32.mrb[0].mxu1 }
  0xea   : > { %v375_v24 = vmul.f32 %v358_v16, %v328_v22  ;;  %v379_v25 = vmul.f32 %v368_v17, %v340_v23  ;;  %v330_v26 = vpop.f32.mrb[1].mxu0  ;;  %v342_v27 = vpop.f32.mrb[1].mxu1 }
  0xeb   : > { %v376_v29 = vmul.f32 %v358_v16, %v330_v26  ;;  %v380_v30 = vmul.f32 %v368_v17, %v342_v27 }
  0xec   : > { %v407_v31 = vadd.f32 %v390_v20, %v375_v24  ;;  %v411_v32 = vadd.f32 %v400_v28, %v379_v25 }
  0xed   : > { %v408_v33 = vadd.f32 %v390_v20, %v376_v29  ;;  %v412_v34 = vadd.f32 %v400_v28, %v380_v30  ;;  %v334_v35 = vpop.f32.mrb[2].mxu0  ;;  %v346_v36 = vpop.f32.mrb[2].mxu1 }
  0xee   : > { %v415_v37 = vmax.f32 %v407_v31, 0.0  ;;  %v419_v38 = vmax.f32 %v411_v32, 0.0  ;;  %v377_v39 = vmul.f32 %v363_v18, %v334_v35  ;;  %v381_v40 = vmul.f32 %v373_v19, %v346_v36  ;;  %v336_v41 = vpop.f32.mrb[3].mxu0  ;;  %v348_v42 = vpop.f32.mrb[3].mxu1 }
  0xef   : > { %v416_v44 = vmax.f32 %v408_v33, 0.0  ;;  %v420_v45 = vmax.f32 %v412_v34, 0.0  ;;  %v378_v46 = vmul.f32 %v363_v18, %v336_v41  ;;  %v382_v47 = vmul.f32 %v373_v19, %v348_v42 }
  0xf0   : > { %423 = vst [vmem:[%s687_s28] sm:$0xff] %v415_v37  ;;  %427 = vst [vmem:[%s687_s28 + $0x20] sm:$0xff] %v419_v38  ;;  %v409_v48 = vadd.f32 %v395_v21, %v377_v39  ;;  %v413_v49 = vadd.f32 %v405_v43, %v381_v40 }
  0xf1   : > { %424 = vst [vmem:[%s687_s28 + $0x8] sm:$0xff] %v416_v44  ;;  %428 = vst [vmem:[%s687_s28 + $0x28] sm:$0xff] %v420_v45  ;;  %v410_v50 = vadd.f32 %v395_v21, %v378_v46  ;;  %v414_v51 = vadd.f32 %v405_v43, %v382_v47 }
  0xf2   : > { %v417_v52 = vmax.f32 %v409_v48, 0.0  ;;  %v421_v53 = vmax.f32 %v413_v49, 0.0 }
  0xf3   : > { %v418_v54 = vmax.f32 %v410_v50, 0.0  ;;  %v422_v55 = vmax.f32 %v414_v51, 0.0 }
  0xf4   : > { %425 = vst [vmem:[%s687_s28 + $0x10] sm:$0xff] %v417_v52  ;;  %429 = vst [vmem:[%s687_s28 + $0x30] sm:$0xff] %v421_v53 }
  0xf5   : > { %426 = vst [vmem:[%s687_s28 + $0x18] sm:$0xff] %v418_v54  ;;  %430 = vst [vmem:[%s687_s28 + $0x38] sm:$0xff] %v422_v55 }
  0xf6 PF: > { %s14_s17 = sadd.s32 1, %s590_s17   ;;  %s711_s15 = smov %s586_s16 }
  0xf7   : > { %p11_p5 = scmp.ge.s32.totalorder %s14_s17, 4   ;;  %s712_s16 = smov %s714_s18 }
  0xf9   :  { %13 = sbr.rel (!%p11_p5) target bundleno = 2 (0x2), region = 66 }

</bundles_post_ra>
